<compile_context>
chip_gen: v7x
topology: tpu7x:2x2x1
jax: 0.10.0
libtpu: 0.0.40
codegen_flags: <defaults>
</compile_context>

<pallas_src>
import math

import jax
import jax.numpy as jnp
from jax.experimental import pallas as pl
from jax.experimental.pallas import tpu as pltpu

_LOG2 = math.log(2.0)          # torch.log(torch.tensor(2.0)).item()
_SOFTPLUS_THRESHOLD = 20.0     # torch.nn.functional.softplus default threshold
_LANES = 512                   # lane-dense slab width (multiple of 128)


def _shifted_softplus_kernel(x_ref, o_ref):
    xf = x_ref[...].astype(jnp.float32)
    # Numerically stable softplus: max(x, 0) + log1p(exp(-|x|)); exp's argument
    # is always <= 0, so no inf/NaN leaks through the select below.
    sp = jnp.maximum(xf, 0.0) + jnp.log1p(jnp.exp(-jnp.abs(xf)))
    # Match PyTorch's threshold semantics exactly: softplus(x) = x for x > 20.
    sp = jnp.where(xf > _SOFTPLUS_THRESHOLD, xf, sp)
    o_ref[...] = (sp - _LOG2).astype(o_ref.dtype)


def _jnp_shifted_softplus(x):
    """Fused-XLA fallback (tiny inputs / tail), same stable formula."""
    xf = x.astype(jnp.float32)
    sp = jnp.maximum(xf, 0.0) + jnp.log1p(jnp.exp(-jnp.abs(xf)))
    sp = jnp.where(xf > _SOFTPLUS_THRESHOLD, xf, sp)
    return (sp - _LOG2).astype(x.dtype)


def _cdiv(a, b):
    return -(-a // b)


def _pallas_body(x2, block_bytes):
    """Run the kernel over a (rows, _LANES) lane-dense slab."""
    rows, lanes = x2.shape
    dtype = x2.dtype
    itemsize = jnp.dtype(dtype).itemsize
    # Sublane multiple for this dtype's packing: 8 (f32), 16 (bf16), 32 (int8).
    sub = max(8, 32 // itemsize)

    if rows <= sub:
        tm = rows                                   # full-extent block is legal
    else:
        bytes_per_row = lanes * itemsize
        tm = max(sub, (block_bytes // bytes_per_row) // sub * sub)
        # Guarantee >= 2 grid steps so v7x can shard rows across its 2 TCs.
        half = max(sub, _cdiv(_cdiv(rows, 2), sub) * sub)
        tm = min(tm, half)
        tm = min(tm, (rows // sub) * sub)           # keep tm <= rows, sublane-aligned

    grid = (_cdiv(rows, tm),)
    n = rows * lanes
    cost = pl.CostEstimate(
        flops=5 * n,
        transcendentals=2 * n,
        bytes_accessed=2 * n * itemsize,
    )

    return pl.pallas_call(
        _shifted_softplus_kernel,
        out_shape=jax.ShapeDtypeStruct((rows, lanes), dtype),
        grid_spec=pltpu.PrefetchScalarGridSpec(
            num_scalar_prefetch=0,
            grid=grid,
            in_specs=[pl.BlockSpec((tm, lanes), lambda i: (i, 0))],
            out_specs=pl.BlockSpec((tm, lanes), lambda i: (i, 0)),
        ),
        compiler_params=pltpu.CompilerParams(
            dimension_semantics=("parallel",),
        ),
        cost_estimate=cost,
    )(x2)


def shifted_softplus(x, *, block_bytes=2 * 1024 * 1024, min_pallas_elems=128 * 1024):
    """softplus(x) - log(2), elementwise. Pallas TPU kernel for large inputs."""
    total = int(x.size)
    orig_shape = x.shape

    # Tiny tensors: launch + wrapper overhead dominates; use fused XLA.
    if total == 0 or total < min_pallas_elems:
        return _jnp_shifted_softplus(x)

    flat = x.reshape(-1)
    body = (total // _LANES) * _LANES
    if body == 0:
        return _jnp_shifted_softplus(x)

    body_out = _pallas_body(flat[:body].reshape(body // _LANES, _LANES), block_bytes)
    body_out = body_out.reshape(-1)

    if body == total:
        # Common case: no tail, no padding, no extra HBM passes.
        return body_out.reshape(orig_shape)

    # Sub-512-element tail handled with plain jnp instead of padding the array.
    tail_out = _jnp_shifted_softplus(flat[body:])
    return jnp.concatenate([body_out, tail_out]).reshape(orig_shape)


def _reference(x):
    xf = x.astype(jnp.float32)
    sp = jnp.where(
        xf > _SOFTPLUS_THRESHOLD,
        xf,
        jnp.log1p(jnp.exp(jnp.minimum(xf, _SOFTPLUS_THRESHOLD))),
    )
    return (sp - _LOG2).astype(x.dtype)


if __name__ == "__main__":
    key = jax.random.PRNGKey(0)
    k1, k2, k3 = jax.random.split(key, 3)

    # Small SchNet-style shape: (batch=8, hidden=32) -> small-input fallback path.
    x1 = jax.random.normal(k1, (8, 32), dtype=jnp.float32) * 5.0
    # Multi-dim shape, 2048 elems (multiple of 512) -> Pallas body, no tail.
    x2 = jax.random.normal(k2, (2, 4, 16, 16), dtype=jnp.float32) * 10.0
    # Odd size, 3003 elems -> Pallas body + jnp tail path.
    x3 = jax.random.normal(k3, (3, 7, 11, 13), dtype=jnp.float32) * 10.0

    ok = True

    # Default path (fallback for tiny inputs).
    y1 = jax.block_until_ready(shifted_softplus(x1))
    ok = ok and bool(jnp.allclose(y1, _reference(x1), atol=1e-5, rtol=1e-5))
    ok = ok and (y1.shape == x1.shape)

    # Force the Pallas path at small test shapes to exercise the kernel.
    for x in (x2, x3):
        y = jax.block_until_ready(shifted_softplus(x, min_pallas_elems=0))
        ok = ok and bool(jnp.allclose(y, _reference(x), atol=1e-5, rtol=1e-5))
        ok = ok and (y.shape == x.shape)

    assert ok, "mismatch vs reference"
    print("KERNEL_OK")
</pallas_src>

<mosaic_0001>
module attributes {stable_mosaic.version = 11 : i64} {
  func.func @_shifted_softplus_kernel(%arg0: i32, %arg1: memref<4x512xf32, #tpu.memory_space<vmem>>, %arg2: memref<4x512xf32, #tpu.memory_space<vmem>>) attributes {dimension_semantics = [#tpu.dimension_semantics<parallel>], iteration_bounds = array<i64: 1>, scalar_prefetch = 0 : i64, scratch_operands = 0 : i64, tpu.core_type = #tpu.core_type<tc>, window_params = [{transform_indices = @transform_0, window_bounds = array<i64: 4, 512>}, {transform_indices = @transform_1, window_bounds = array<i64: 4, 512>}]} {
    %c0 = arith.constant 0 : index
    %c0_0 = arith.constant 0 : index
    %0 = vector.load %arg1[%c0, %c0_0] : memref<4x512xf32, #tpu.memory_space<vmem>>, vector<4x512xf32>
    %cst = arith.constant 0.000000e+00 : f32
    %1 = vector.broadcast %cst : f32 to vector<4x512xf32>
    %2 = arith.maximumf %0, %1 : vector<4x512xf32>
    %3 = math.absf %0 : vector<4x512xf32>
    %cst_1 = arith.constant 0.000000e+00 : f32
    %4 = vector.broadcast %cst_1 : f32 to vector<4x512xf32>
    %5 = arith.subf %4, %3 : vector<4x512xf32>
    %6 = math.exp %5 : vector<4x512xf32>
    %7 = math.log1p %6 : vector<4x512xf32>
    %8 = arith.addf %2, %7 : vector<4x512xf32>
    %cst_2 = arith.constant 2.000000e+01 : f32
    %9 = vector.broadcast %cst_2 : f32 to vector<4x512xf32>
    %10 = arith.cmpf ogt, %0, %9 : vector<4x512xf32>
    %11 = arith.select %10, %0, %8 : vector<4x512xi1>, vector<4x512xf32>
    %cst_3 = arith.constant 0.693147182 : f32
    %12 = vector.broadcast %cst_3 : f32 to vector<4x512xf32>
    %13 = arith.subf %11, %12 : vector<4x512xf32>
    %c0_4 = arith.constant 0 : index
    %c0_5 = arith.constant 0 : index
    %14 = vector.load %arg2[%c0_4, %c0_5] : memref<4x512xf32, #tpu.memory_space<vmem>>, vector<4x512xf32>
    tpu.vector_store %arg2[%c0_4, %c0_5], %13 {strides = array<i32>} : memref<4x512xf32, #tpu.memory_space<vmem>>, vector<4x512xf32>,
    return
  }
  func.func @transform_0(%arg0: i32) -> (i32, i32) {
    %c0_i32 = arith.constant 0 : i32
    %c0_i32_0 = arith.constant 0 : i32
    return %arg0, %c0_i32 : i32, i32
  }
  func.func @transform_1(%arg0: i32) -> (i32, i32) {
    %c0_i32 = arith.constant 0 : i32
    %c0_i32_0 = arith.constant 0 : i32
    return %arg0, %c0_i32 : i32, i32
  }
}

</mosaic_0001>

<bundles_post_ra>
// kernel: tpu_custom_call.1
= control target key start
LH: loop header
LB: loop body
LE: loop exit
PB: predicated region body
PF: predicated region fallthrough
CT: control target
= control target key end

     0   :  { %6 = vsyncpa [#allocation3], 0  ;;  %s172_s0 = inlined_call_operand.hbm [shape: f32[4,512], index: 0, kind: input, shape index: {}]   ;;  %s173_s1 = inlined_call_operand.hbm [shape: f32[4,512], index: 1, kind: output, shape index: {}]  }
   0x1   :  { %7 = vsyncpa [#allocation4], 0  ;;  %s136_s6 = smov [#allocation2]   ;;  %s88_s10 = scalar_lea.hbm %s172_s0, 256 }
   0x2   :  { %s14_s7 = sshll.u32 %s136_s6, 4  ;;  %p89_p0 = scmp.ne.s32.totalorder %s172_s0, %s88_s10  ;;  %s15_s7 = int_to_ptr.vmem [resolvable:$true] %s14_s7 }
   0x3   :  { %p92_p1 = scmp.lt.u32.totalorder %s88_s10, %s172_s0 }
   0x5   :  { %p94_p2 = pnand %p92_p1, %p89_p0 }
   0x7   :  { %97 = shalt.err (!%p94_p2)
}
   0x8   :  { %s98_s15 = scalar_lea.vmem %s15_s7, 256  ;;  %p103_p4 = scmp.lt.s32.totalorder %s15_s7, %s15_s7 }
   0x9   :  { %p99_p3 = scmp.ne.s32.totalorder %s15_s7, %s98_s15  ;;  %p104_p5 = scmp.lt.s32.totalorder %s98_s15, %s98_s15 }
   0xb   :  { %p105_p6 = por %p104_p5, %p103_p4 }
   0xd   :  { %p106_p7 = pnand %p105_p6, %p99_p3 }
   0xf   :  { %109 = shalt.err (!%p106_p7)
}
  0x10   :  { %17 = dma.hbm_to_vmem [thread:$0]  %s172_s0, 256, %s15_s7, [#allocation3]  }
  0x11   :  { %132 = dma.done.wait [#allocation3], 256  }
  0x12   :  { %133 = vsyncadd [#allocation3], 4294967040  ;;  %v21_v0 = vld [vmem:[#allocation2] sm:$0xff]  ;;  %v22_v1 = vld [vmem:[#allocation2 + $0x8] sm:$0xff]  ;;  %s137_s0 = smov [#allocation5]  }
  0x13   :  { %v25_v2 = vand.u32 2147483647, %v21_v0  ;;  %v26_v3 = vand.u32 2147483647, %v22_v1  ;;  %v23_v20 = vmax.f32 %v21_v0, 0.0  ;;  %v24_v24 = vmax.f32 %v22_v1, 0.0 }
  0x14   :  { %vm53_vm2 = vcmp.gt.f32.partialorder %v21_v0, 20.0  ;;  %vm54_vm3 = vcmp.gt.f32.partialorder %v22_v1, 20.0  ;;  %s67_s18 = sshll.u32 %s137_s0, 4  ;;  %s68_s18 = int_to_ptr.vmem [resolvable:$true] %s67_s18 }
  0x15   :  { %v27_v4 = vsub.f32 0.0, %v25_v2  ;;  %v28_v5 = vsub.f32 0.0, %v26_v3  ;;  %s110_s19 = scalar_lea.vmem %s68_s18, 256  ;;  %p115_p9 = scmp.lt.s32.totalorder %s68_s18, %s68_s18 }
  0x16   :  { %p111_p8 = scmp.ne.s32.totalorder %s68_s18, %s110_s19  ;;  %p116_p10 = scmp.lt.s32.totalorder %s110_s19, %s110_s19 }
  0x17   :  { %v29_v6 = vmul.f32 1.442695, %v27_v4  ;;  %v31_v7 = vmul.f32 1.442695, %v28_v5 }
  0x18   :  { %p117_p11 = por %p116_p10, %p115_p9 }
  0x19   :  { %80 = vpow2.f32 %v29_v6 }
  0x1a   :  { %82 = vpow2.f32 %v31_v7  ;;  %p118_p12 = pnand %p117_p11, %p111_p8 }
  0x23   :  { %v81_v8 = vpop.eup %80 }
  0x24   :  { %v83_v9 = vpop.eup %82  ;;  %v33_v10 = vadd.f32 1.0, %v81_v8  ;;  %v36_v12 = vmul.f32 -0.5, %v81_v8  ;;  %v39_v15 = vand.u32 2147483647, %v81_v8 }
  0x25   :  { %v42_v11 = vadd.f32 1.0, %v83_v9  ;;  %v45_v13 = vmul.f32 -0.5, %v83_v9  ;;  %v48_v17 = vand.u32 2147483647, %v83_v9 }
  0x26   :  { %84 = vlog2.f32 %v33_v10  ;;  %v37_v14 = vadd.f32 1.0, %v36_v12  ;;  %vm40_vm0 = vcmp.lt.f32.partialorder %v39_v15, 0.0004427343 }
  0x27   :  { %86 = vlog2.f32 %v42_v11  ;;  %v46_v16 = vadd.f32 1.0, %v45_v13  ;;  %vm49_vm1 = vcmp.lt.f32.partialorder %v48_v17, 0.0004427343 }
  0x28   :  { %v38_v18 = vmul.f32 %v81_v8, %v37_v14 }
  0x29   :  { %v47_v21 = vmul.f32 %v83_v9, %v46_v16 }
  0x30   :  { %v85_v19 = vpop.eup %84 }
  0x31   :  { %v87_v22 = vpop.eup %86  ;;  %v35_v23 = vmul.f32 0.6931472, %v85_v19 }
  0x32   :  { %v44_v25 = vmul.f32 0.6931472, %v87_v22 }
  0x33   :  { %v41_v26 = vsel %vm40_vm0, %v38_v18, %v35_v23 }
  0x34   :  { %v51_v27 = vadd.f32 %v41_v26, %v23_v20  ;;  %v50_v28 = vsel %vm49_vm1, %v47_v21, %v44_v25 }
  0x35   :  { %v52_v29 = vadd.f32 %v50_v28, %v24_v24 }
  0x36   :  { %v55_v30 = vsel %vm53_vm2, %v21_v0, %v51_v27 }
  0x37   :  { %v76_v31 = vadd.f32 -0.6931472, %v55_v30  ;;  %v56_v32 = vsel %vm54_vm3, %v22_v1, %v52_v29 }
  0x38   :  { %v77_v33 = vadd.f32 -0.6931472, %v56_v32 }
  0x39   :  { %59 = vst [vmem:[#allocation5] sm:$0xff] %v76_v31 }
  0x3a   :  { %60 = vst [vmem:[#allocation5 + $0x8] sm:$0xff] %v77_v33 }
  0x3b   :  { %121 = shalt.err (!%p118_p12)
}
  0x3c   :  { %s122_s22 = scalar_lea.hbm %s173_s1, 256 }
  0x3d   :  { %p123_p13 = scmp.ne.s32.totalorder %s173_s1, %s122_s22  ;;  %p126_p0 = scmp.lt.u32.totalorder %s122_s22, %s173_s1 }
  0x3f   :  { %p128_p1 = pnand %p126_p0, %p123_p13 }
  0x41   :  { %131 = shalt.err (!%p128_p1)
}
  0x42   :  { %70 = dma.vmem_to_hbm [thread:$0]  %s68_s18, 256, %s173_s1, [#allocation4]  }
  0x43   :  { %134 = dma.done.wait [#allocation4], 256  }
  0x44   :  { %135 = vsyncadd [#allocation4], 4294967040 }
  0x45   :  { %74 = vsyncpa [#allocation3], 1 }
  0x46   :  { %75 = vsyncpa [#allocation4], 1 }

</bundles_post_ra>
